<compile_context>
chip_gen: v7x
topology: tpu7x:2x2x1
jax: 0.10.0
libtpu: 0.0.40
codegen_flags: <defaults>
</compile_context>

<pallas_src>
import functools

import jax
import jax.numpy as jnp
from jax.experimental import pallas as pl
from jax.experimental.pallas import tpu as pltpu

LANES = 128
MAX_BLOCK_ROWS = 2048  # (2048, 128) f32 tile = 1 MiB per input


def _accuracy_kernel(pr_ref, gt_ref, out_ref, *, n_valid: int,
                     block_rows: int, blocks_per_slice: int):
    """One grid step: compare predictions vs labels, accumulate int32 counts."""
    s = pl.program_id(0)  # parallel (megacore) slice axis
    b = pl.program_id(1)  # accumulation axis within a slice

    @pl.when(b == 0)
    def _():
        out_ref[...] = jnp.zeros_like(out_ref)

    # Global flat index of each element of this tile, used to mask the ragged
    # tail (lane padding + out-of-bounds rows of the last block).
    # int32 math: assumes numel < 2**31.
    block_idx = s * blocks_per_slice + b
    row0 = block_idx * block_rows
    r = jax.lax.broadcasted_iota(jnp.int32, (block_rows, LANES), 0)
    c = jax.lax.broadcasted_iota(jnp.int32, (block_rows, LANES), 1)
    flat_idx = (row0 + r) * LANES + c
    valid = flat_idx < n_valid

    # round(sigmoid(x)) in {0.0, 1.0}; equal to (x > 0) as a float.  Pure VPU,
    # no EUP transcendental.  (Differs from sigmoid+round only for |x|<~6e-8.)
    pred = (pr_ref[...] > 0).astype(jnp.float32)
    gt = gt_ref[...].astype(jnp.float32)
    match = jnp.logical_and(pred == gt, valid)

    # Element-wise accumulation into the resident, lane-dense output block.
    out_ref[...] += match.astype(jnp.int32)[None, :, :]


def accuracy(y_pr: jax.Array, y_gt: jax.Array) -> jax.Array:
    """Pallas TPU implementation of the Accuracy module's forward pass."""
    pr_flat = jnp.reshape(y_pr, (-1,))
    gt_flat = jnp.reshape(y_gt, (-1,))
    if pr_flat.shape[0] != gt_flat.shape[0]:
        raise ValueError("y_pr and y_gt must have the same number of elements")
    n = int(gt_flat.shape[0])
    if n == 0:
        return jnp.float32(float("nan"))  # matches torch 0/0

    # View as (rows, 128).  Pad (< 128 elems) only when numel % 128 != 0; the
    # pad values are irrelevant because they are masked in-kernel.
    rows = (n + LANES - 1) // LANES
    padded = rows * LANES
    if padded != n:
        pr_flat = jnp.pad(pr_flat, (0, padded - n))
        gt_flat = jnp.pad(gt_flat, (0, padded - n))
    pr2d = pr_flat.reshape(rows, LANES)
    gt2d = gt_flat.reshape(rows, LANES)

    block_rows = rows if rows < MAX_BLOCK_ROWS else MAX_BLOCK_ROWS
    num_blocks = (rows + block_rows - 1) // block_rows
    # Split across 2 TensorCores (v7x) only when the block count divides
    # evenly, so no block is ever fully out of bounds.
    num_slices = 2 if (num_blocks >= 2 and num_blocks % 2 == 0) else 1
    blocks_per_slice = num_blocks // num_slices

    partial = pl.pallas_call(
        functools.partial(
            _accuracy_kernel,
            n_valid=n,
            block_rows=block_rows,
            blocks_per_slice=blocks_per_slice,
        ),
        out_shape=jax.ShapeDtypeStruct(
            (num_slices, block_rows, LANES), jnp.int32),
        grid=(num_slices, blocks_per_slice),
        in_specs=[
            pl.BlockSpec((block_rows, LANES),
                         lambda s, b: (s * blocks_per_slice + b, 0)),
            pl.BlockSpec((block_rows, LANES),
                         lambda s, b: (s * blocks_per_slice + b, 0)),
        ],
        out_specs=pl.BlockSpec((1, block_rows, LANES),
                               lambda s, b: (s, 0, 0)),
        compiler_params=pltpu.CompilerParams(
            dimension_semantics=("parallel", "arbitrary")),
    )(pr2d, gt2d)

    count = jnp.sum(partial)  # exact int32 match count
    return count.astype(jnp.float32) / jnp.float32(n)


def _reference(y_pr, y_gt):
    p = jnp.round(jax.nn.sigmoid(jnp.reshape(y_pr, (-1,))))
    g = jnp.reshape(y_gt, (-1,))
    return jnp.mean((p == g).astype(jnp.float32))


if __name__ == "__main__":
    key = jax.random.PRNGKey(0)

    # Small primary case consistent with the module (logits + binary mask),
    # plus a ragged case (pad+mask path) and a multi-block/megacore case.
    test_shapes = [(2, 4, 16, 16), (7, 13, 11), (3, 999, 321)]

    for shape in test_shapes:
        key, k1, k2 = jax.random.split(key, 3)
        y_pr = jax.random.normal(k1, shape, dtype=jnp.float32)
        y_gt = jax.random.bernoulli(k2, 0.5, shape).astype(jnp.float32)

        score = accuracy(y_pr, y_gt)
        jax.block_until_ready(score)

        ref = _reference(y_pr, y_gt)
        assert jnp.allclose(score, ref, atol=1e-6), (shape, score, ref)

    print("KERNEL_OK")
</pallas_src>

<mosaic_0001>
module attributes {stable_mosaic.version = 11 : i64} {
  func.func @_accuracy_kernel(%arg0: i32, %arg1: i32, %arg2: memref<16x128xf32, #tpu.memory_space<vmem>>, %arg3: memref<16x128xf32, #tpu.memory_space<vmem>>, %arg4: memref<1x16x128xi32, #tpu.memory_space<vmem>>) attributes {dimension_semantics = [#tpu.dimension_semantics<parallel>, #tpu.dimension_semantics<arbitrary>], iteration_bounds = array<i64: 1, 1>, scalar_prefetch = 0 : i64, scratch_operands = 0 : i64, tpu.core_type = #tpu.core_type<tc>, window_params = [{transform_indices = @transform_0, window_bounds = array<i64: 16, 128>}, {transform_indices = @transform_1, window_bounds = array<i64: 16, 128>}, {transform_indices = @transform_2, window_bounds = array<i64: 1, 16, 128>}]} {
    %c0_i32 = arith.constant 0 : i32
    %0 = arith.cmpi eq, %arg1, %c0_i32 : i32
    %1 = arith.extui %0 : i1 to i32
    %c0_i32_0 = arith.constant 0 : i32
    %2 = arith.cmpi ne, %1, %c0_i32_0 : i32
    scf.if %2 {
      %c0_i32_10 = arith.constant 0 : i32
      %28 = vector.broadcast %c0_i32_10 : i32 to vector<1x16x128xi32>
      %c0_11 = arith.constant 0 : index
      %c0_12 = arith.constant 0 : index
      %c0_13 = arith.constant 0 : index
      %29 = vector.load %arg4[%c0_11, %c0_12, %c0_13] : memref<1x16x128xi32, #tpu.memory_space<vmem>>, vector<1x16x128xi32>
      tpu.vector_store %arg4[%c0_11, %c0_12, %c0_13], %28 {strides = array<i32>} : memref<1x16x128xi32, #tpu.memory_space<vmem>>, vector<1x16x128xi32>,
    } else {
    }
    %c1_i32 = arith.constant 1 : i32
    %3 = arith.muli %arg0, %c1_i32 : i32
    %4 = arith.addi %3, %arg1 : i32
    %c16_i32 = arith.constant 16 : i32
    %5 = arith.muli %4, %c16_i32 : i32
    %6 = tpu.iota {dimensions = array<i32: 0>} : vector<16x128xi32>
    %7 = tpu.iota {dimensions = array<i32: 1>} : vector<16x128xi32>
    %8 = vector.broadcast %5 : i32 to vector<16x128xi32>
    %9 = arith.addi %8, %6 : vector<16x128xi32>
    %c128_i32 = arith.constant 128 : i32
    %10 = vector.broadcast %c128_i32 : i32 to vector<16x128xi32>
    %11 = arith.muli %9, %10 : vector<16x128xi32>
    %12 = arith.addi %11, %7 : vector<16x128xi32>
    %c2048_i32 = arith.constant 2048 : i32
    %13 = vector.broadcast %c2048_i32 : i32 to vector<16x128xi32>
    %14 = arith.cmpi slt, %12, %13 : vector<16x128xi32>
    %c0 = arith.constant 0 : index
    %c0_1 = arith.constant 0 : index
    %15 = vector.load %arg2[%c0, %c0_1] : memref<16x128xf32, #tpu.memory_space<vmem>>, vector<16x128xf32>
    %cst = arith.constant 0.000000e+00 : f32
    %16 = vector.broadcast %cst : f32 to vector<16x128xf32>
    %17 = arith.cmpf ogt, %15, %16 : vector<16x128xf32>
    %18 = arith.extui %17 : vector<16x128xi1> to vector<16x128xi32>
    %19 = arith.sitofp %18 : vector<16x128xi32> to vector<16x128xf32>
    %c0_2 = arith.constant 0 : index
    %c0_3 = arith.constant 0 : index
    %20 = vector.load %arg3[%c0_2, %c0_3] : memref<16x128xf32, #tpu.memory_space<vmem>>, vector<16x128xf32>
    %21 = arith.cmpf oeq, %19, %20 : vector<16x128xf32>
    %22 = arith.andi %21, %14 : vector<16x128xi1>
    %c0_4 = arith.constant 0 : index
    %c0_5 = arith.constant 0 : index
    %c0_6 = arith.constant 0 : index
    %23 = vector.load %arg4[%c0_4, %c0_5, %c0_6] : memref<1x16x128xi32, #tpu.memory_space<vmem>>, vector<1x16x128xi32>
    %24 = arith.extui %22 : vector<16x128xi1> to vector<16x128xi32>
    %25 = vector.shape_cast %24 : vector<16x128xi32> to vector<1x16x128xi32>
    %26 = arith.addi %23, %25 : vector<1x16x128xi32>
    %c0_7 = arith.constant 0 : index
    %c0_8 = arith.constant 0 : index
    %c0_9 = arith.constant 0 : index
    %27 = vector.load %arg4[%c0_7, %c0_8, %c0_9] : memref<1x16x128xi32, #tpu.memory_space<vmem>>, vector<1x16x128xi32>
    tpu.vector_store %arg4[%c0_7, %c0_8, %c0_9], %26 {strides = array<i32>} : memref<1x16x128xi32, #tpu.memory_space<vmem>>, vector<1x16x128xi32>,
    return
  }
  func.func @transform_0(%arg0: i32, %arg1: i32) -> (i32, i32) {
    %c1_i32 = arith.constant 1 : i32
    %0 = arith.muli %arg0, %c1_i32 : i32
    %1 = arith.addi %0, %arg1 : i32
    %c0_i32 = arith.constant 0 : i32
    %c0_i32_0 = arith.constant 0 : i32
    return %1, %c0_i32 : i32, i32
  }
  func.func @transform_1(%arg0: i32, %arg1: i32) -> (i32, i32) {
    %c1_i32 = arith.constant 1 : i32
    %0 = arith.muli %arg0, %c1_i32 : i32
    %1 = arith.addi %0, %arg1 : i32
    %c0_i32 = arith.constant 0 : i32
    %c0_i32_0 = arith.constant 0 : i32
    return %1, %c0_i32 : i32, i32
  }
  func.func @transform_2(%arg0: i32, %arg1: i32) -> (i32, i32, i32) {
    %c0_i32 = arith.constant 0 : i32
    %c0_i32_0 = arith.constant 0 : i32
    %c0_i32_1 = arith.constant 0 : i32
    return %arg0, %c0_i32, %c0_i32_0 : i32, i32, i32
  }
}

</mosaic_0001>

<bundles_post_ra>
// kernel: tpu_custom_call.1
= control target key start
LH: loop header
LB: loop body
LE: loop exit
PB: predicated region body
PF: predicated region fallthrough
CT: control target
= control target key end

     0   :  { %7 = vsyncpa [#allocation3], 0  ;;  %s262_s0 = inlined_call_operand.hbm [shape: f32[16,128], index: 0, kind: input, shape index: {}]   ;;  %s263_s1 = inlined_call_operand.hbm [shape: f32[16,128], index: 1, kind: input, shape index: {}]   ;;  %s264_s2 = inlined_call_operand.hbm [shape: s32[1,16,128], index: 2, kind: output, shape index: {}]  }
   0x1   :  { %8 = vsyncpa [#allocation6], 0 }
   0x2   :  { %9 = vsyncpa [#allocation4], 0  ;;  %s195_s9 = smov [#allocation2]   ;;  %s123_s13 = scalar_lea.hbm %s262_s0, 256 }
   0x3   :  { %s19_s10 = sshll.u32 %s195_s9, 4  ;;  %p124_p0 = scmp.ne.s32.totalorder %s262_s0, %s123_s13  ;;  %s20_s10 = int_to_ptr.vmem [resolvable:$true] %s19_s10 }
   0x4   :  { %p127_p1 = scmp.lt.u32.totalorder %s123_s13, %s262_s0 }
   0x6   :  { %p129_p2 = pnand %p127_p1, %p124_p0 }
   0x8   :  { %132 = shalt.err (!%p129_p2)
}
   0x9   :  { %s133_s18 = scalar_lea.vmem %s20_s10, 256  ;;  %p138_p4 = scmp.lt.s32.totalorder %s20_s10, %s20_s10 }
   0xa   :  { %p134_p3 = scmp.ne.s32.totalorder %s20_s10, %s133_s18  ;;  %p139_p5 = scmp.lt.s32.totalorder %s133_s18, %s133_s18 }
   0xc   :  { %p140_p6 = por %p139_p5, %p138_p4 }
   0xe   :  { %p141_p7 = pnand %p140_p6, %p134_p3 }
  0x10   :  { %144 = shalt.err (!%p141_p7)
}
  0x11   :  { %s196_s19 = smov 128   ;;  %s197_s20 = smov 8  }
  0x12   :  { %25 = dma.hbm_to_vmem [thread:$0]  %s262_s0, 256, %s20_s10, [#allocation3], %s196_s19, %s196_s19, %s197_s20  }
  0x13   :  { %s198_s23 = smov [#allocation5]   ;;  %s145_s27 = scalar_lea.hbm %s263_s1, 256 }
  0x14   :  { %s35_s24 = sshll.u32 %s198_s23, 4  ;;  %p146_p8 = scmp.ne.s32.totalorder %s263_s1, %s145_s27  ;;  %s36_s24 = int_to_ptr.vmem [resolvable:$true] %s35_s24 }
  0x15   :  { %p149_p9 = scmp.lt.u32.totalorder %s145_s27, %s263_s1 }
  0x17   :  { %p151_p10 = pnand %p149_p9, %p146_p8 }
  0x19   :  { %154 = shalt.err (!%p151_p10)
}
  0x1a   :  { %s155_s4 = scalar_lea.vmem %s36_s24, 256  ;;  %p160_p12 = scmp.lt.s32.totalorder %s36_s24, %s36_s24 }
  0x1b   :  { %p156_p11 = scmp.ne.s32.totalorder %s36_s24, %s155_s4  ;;  %p161_p13 = scmp.lt.s32.totalorder %s155_s4, %s155_s4 }
  0x1d   :  { %p162_p0 = por %p161_p13, %p160_p12 }
  0x1f   :  { %p163_p1 = pnand %p162_p0, %p156_p11 }
  0x21   :  { %166 = shalt.err (!%p163_p1)
}
  0x22   :  { %41 = dma.hbm_to_vmem [thread:$0]  %s263_s1, 256, %s36_s24, [#allocation6], %s196_s19, %s196_s19, %s197_s20  }
  0x23   :  { %189 = dma.done.wait [#allocation3], 256  }
  0x24   :  { %190 = vsyncadd [#allocation3], 4294967040 }
  0x25   :  { %191 = dma.done.wait [#allocation6], 256  }
  0x26   :  { %192 = vsyncadd [#allocation6], 4294967040  ;;  %v60_v0 = vlaneseq  ;;  %v74_v7 = vld [vmem:[#allocation2] sm:$0xff]  ;;  %v82_v8 = vld [vmem:[#allocation5] sm:$0xff]  ;;  %v199_v12 = vmov 0.0   ;;  %s200_s1 = smov [#allocation7]  }
  0x27   :  { %v75_v9 = vld [vmem:[#allocation2 + $0x8] sm:$0xff]  ;;  %vm76_vm1 = vcmp.gt.f32.partialorder %v74_v7, 0.0  ;;  %v83_v11 = vld [vmem:[#allocation5 + $0x8] sm:$0xff]  ;;  %s101_s6 = sshll.u32 %s200_s1, 4  ;;  %v201_v15 = vmov 0   ;;  %s102_s6 = int_to_ptr.vmem [resolvable:$true] %s101_s6 }
  0x28   :  { %v61_v1 = vshrl.u32 %v60_v0, 7  ;;  %v64_v2 = vand.u32 127, %v60_v0  ;;  %vm77_vm2 = vcmp.gt.f32.partialorder %v75_v9, 0.0  ;;  %v114_v13 = vsel %vm76_vm1, 1.0, %v199_v12  ;;  %s167_s7 = scalar_lea.vmem %s102_s6, 256  ;;  %p172_p3 = scmp.lt.s32.totalorder %s102_s6, %s102_s6 }
  0x29   :  { %v115_v14 = vsel %vm77_vm2, 1.0, %v199_v12  ;;  %vm84_vm3 = vcmp.eq.f32.partialorder %v114_v13, %v82_v8  ;;  %p168_p2 = scmp.ne.s32.totalorder %s102_s6, %s167_s7  ;;  %p173_p4 = scmp.lt.s32.totalorder %s167_s7, %s167_s7 }
  0x2a   :  { %v68_v3 = vmul.u32 128, %v61_v1  ;;  %v62_v4 = vadd.s32 8, %v61_v1  ;;  %vm85_vm5 = vcmp.eq.f32.partialorder %v115_v14, %v83_v11 }
  0x2b   :  { %p174_p5 = por %p173_p4, %p172_p3 }
  0x2c   :  { %v70_v5 = vadd.s32 %v68_v3, %v64_v2  ;;  %v69_v6 = vmul.u32 128, %v62_v4 }
  0x2d   :  { %p175_p6 = pnand %p174_p5, %p168_p2 }
  0x2e   :  { %vm72_vm0 = vcmp.lt.s32.totalorder %v70_v5, 2048  ;;  %v71_v10 = vadd.s32 %v69_v6, %v64_v2 }
  0x2f   :  { %vm86_vm6 = vmand %vm84_vm3, %vm72_vm0 }
  0x30   :  { %vm73_vm4 = vcmp.lt.s32.totalorder %v71_v10, 2048  ;;  %v90_v16 = vsel %vm86_vm6, 1, %v201_v15 }
  0x31   :  { %vm87_vm7 = vmand %vm85_vm5, %vm73_vm4  ;;  %94 = vst [vmem:[#allocation7] sm:$0xff] %v90_v16 }
  0x32   :  { %v91_v17 = vsel %vm87_vm7, 1, %v201_v15 }
  0x33   :  { %95 = vst [vmem:[#allocation7 + $0x8] sm:$0xff] %v91_v17 }
  0x34   :  { %178 = shalt.err (!%p175_p6)
}
  0x35   :  { %s179_s10 = scalar_lea.hbm %s264_s2, 256 }
  0x36   :  { %p180_p7 = scmp.ne.s32.totalorder %s264_s2, %s179_s10  ;;  %p183_p8 = scmp.lt.u32.totalorder %s179_s10, %s264_s2 }
  0x38   :  { %p185_p9 = pnand %p183_p8, %p180_p7 }
  0x3a   :  { %188 = shalt.err (!%p185_p9)
}
  0x3b   :  { %107 = dma.vmem_to_hbm [thread:$0]  %s102_s6, 256, %s264_s2, [#allocation4], %s196_s19, %s196_s19, %s197_s20  }
  0x3c   :  { %193 = dma.done.wait [#allocation4], 256  }
  0x3d   :  { %194 = vsyncadd [#allocation4], 4294967040 }
  0x3e   :  { %111 = vsyncpa [#allocation3], 1 }
  0x3f   :  { %112 = vsyncpa [#allocation6], 1 }
  0x40   :  { %113 = vsyncpa [#allocation4], 1 }

</bundles_post_ra>
